<compile_context>
chip_gen: v5e
topology: v5e:2x2
jax: 0.10.0
libtpu: 0.0.40
codegen_flags: <defaults>
</compile_context>

<pallas_src>
import functools

import jax
import jax.numpy as jnp
from jax.experimental import pallas as pl
from jax.experimental.pallas import tpu as pltpu


def _round_up(x, m):
    return ((x + m - 1) // m) * m


def _mlp_kernel(*refs, n_layers):
    """Fused MLP: x -> [Linear -> ReLU]*(n_layers-1) -> Linear.

    refs = (x_ref, w0_ref, b0_ref, ..., w_{L-1}_ref, b_{L-1}_ref, o_ref)
    Matmuls run on the MXU (bf16 operands, f32 accumulation); the bias add
    and ReLU epilogue stay in f32 on the VPU. Only the final, 128-padded
    layer output is written back (lane-dense store).
    """
    x_ref = refs[0]
    o_ref = refs[-1]
    h = x_ref[...].astype(jnp.float32)
    for li in range(n_layers):
        w_ref = refs[1 + 2 * li]
        b_ref = refs[2 + 2 * li]
        y = jnp.dot(h.astype(w_ref.dtype), w_ref[...],
                    preferred_element_type=jnp.float32)
        y = y + b_ref[...].astype(jnp.float32)
        if li < n_layers - 1:          # ReLU after every hidden Linear
            y = jnp.maximum(y, 0.0)
        h = y
    o_ref[...] = h.astype(o_ref.dtype)


def _pick_batch_tile(B8, Din, weights, biases, dout_pad, requested=None,
                     budget_bytes=24 << 20):
    """Largest sublane-aligned batch tile whose working set fits a VMEM budget."""
    resident = (sum(w.size * w.dtype.itemsize for w in weights)
                + sum(b.size * b.dtype.itemsize for b in biases))
    max_feat = max([Din, dout_pad] + [w.shape[1] for w in weights])
    # Per batch-row bytes: double-buffered x tile + double-buffered out tile
    # + a few f32/bf16 activation copies of the widest layer held in VMEM/vregs.
    per_row = 2 * Din * 4 + 2 * dout_pad * 4 + 4 * max_feat * 4

    if requested is not None:
        tb = _round_up(min(requested, B8), 8)
    else:
        tb = min(_round_up(B8, 8), 512)
        while tb > 8 and resident + tb * per_row > budget_bytes:
            tb = _round_up(tb // 2, 8)
    est_vmem = resident + tb * per_row
    return tb, est_vmem


def mlp_forward_pallas(x, weights, biases, *, batch_tile=None, interpret=False):
    """Fused MLP forward.

    x: (B, Din) f32.  weights[i]: (din_pad_i, dout_pad_i) (bf16 or f32,
    zero-padded).  biases[i]: (1, dout_pad_i) f32 (zero-padded).
    Returns (B_pad, Dout_pad); caller slices off the padding.
    """
    n_layers = len(weights)
    B, Din = x.shape
    assert Din == weights[0].shape[0]
    Dout_pad = weights[-1].shape[1]

    # ---- batch tiling (sublane-aligned, VMEM-budgeted) -----------------
    B8 = _round_up(B, 8)
    TB, est_vmem = _pick_batch_tile(B8, Din, weights, biases, Dout_pad,
                                    requested=batch_tile)
    B_pad = _round_up(B8, TB)
    if B_pad != B:
        x = jnp.pad(x, ((0, B_pad - B), (0, 0)))

    grid = (B_pad // TB,)

    in_specs = [pl.BlockSpec((TB, Din), lambda i: (i, 0))]
    for w, b in zip(weights, biases):
        # Full-array blocks, same block index every step -> VMEM-resident.
        in_specs.append(pl.BlockSpec(w.shape, lambda i: (0, 0)))
        in_specs.append(pl.BlockSpec(b.shape, lambda i: (0, 0)))
    out_specs = pl.BlockSpec((TB, Dout_pad), lambda i: (i, 0))

    flops = 2 * B_pad * sum(w.shape[0] * w.shape[1] for w in weights)
    bytes_accessed = (
        x.size * x.dtype.itemsize
        + sum(w.size * w.dtype.itemsize for w in weights)
        + sum(b.size * b.dtype.itemsize for b in biases)
        + B_pad * Dout_pad * x.dtype.itemsize)

    # Leave default scoped-VMEM alone unless the estimate needs more; cap at
    # 64 MiB so the same code is safe on v7x (64 MiB physical VMEM per TC).
    vmem_limit = min(64 << 20, max(32 << 20, int(est_vmem * 2)))

    kernel = functools.partial(_mlp_kernel, n_layers=n_layers)
    flat_params = [a for wb in zip(weights, biases) for a in wb]
    return pl.pallas_call(
        kernel,
        out_shape=jax.ShapeDtypeStruct((B_pad, Dout_pad), x.dtype),
        grid_spec=pl.GridSpec(grid=grid, in_specs=in_specs, out_specs=out_specs),
        compiler_params=pltpu.CompilerParams(
            dimension_semantics=("parallel",),   # megacore sharding on v7x
            vmem_limit_bytes=vmem_limit),
        cost_estimate=pl.CostEstimate(
            flops=flops, transcendentals=0, bytes_accessed=bytes_accessed),
        interpret=interpret,
    )(x, *flat_params)


class SeqPersoPallas:
    """Pallas equivalent of SeqPerso(dimin, dimout, layer) forward pass
    (defaults d=0, norm=False): x -> [Linear -> ReLU]*len(layer) -> Linear.

    Parameters are initialized like torch.nn.Linear (uniform in
    [-1/sqrt(fan_in), 1/sqrt(fan_in)]) from a fixed PRNGKey, then zero-padded
    to lane-friendly (multiple-of-128) feature widths.
    """
    # TODO(synk): Dropout (d>0) and BatchNorm1d (norm=True) branches of the
    # original module are not implemented (defaults d=0, norm=False used).

    def __init__(self, dimin, dimout, layer, key, *,
                 param_dtype=jnp.bfloat16, batch_tile=None):
        self.dimin = dimin
        self.dimout = dimout
        self.batch_tile = batch_tile
        dims = [dimin] + list(layer) + [dimout]
        dims_pad = [dimin] + [_round_up(d, 128) for d in dims[1:]]
        self.n_layers = len(dims) - 1

        keys = jax.random.split(key, 2 * self.n_layers)
        self.weights_f32 = []   # (din_pad, dout_pad) f32, zero-padded
        self.biases = []        # (1, dout_pad)      f32, zero-padded
        for li in range(self.n_layers):
            fan_in, fan_out = dims[li], dims[li + 1]
            fan_in_p, fan_out_p = dims_pad[li], dims_pad[li + 1]
            bound = 1.0 / (fan_in ** 0.5)
            # torch.nn.Linear stores weight as (out, in); transpose once here.
            w = jax.random.uniform(keys[2 * li], (fan_out, fan_in),
                                   jnp.float32, -bound, bound)
            b = jax.random.uniform(keys[2 * li + 1], (fan_out,),
                                   jnp.float32, -bound, bound)
            w_t = jnp.pad(jnp.transpose(w),
                          ((0, fan_in_p - fan_in), (0, fan_out_p - fan_out)))
            b = jnp.pad(b, (0, fan_out_p - fan_out)).reshape(1, fan_out_p)
            self.weights_f32.append(w_t)
            self.biases.append(b)
        # MXU-operand copies (bf16 by default); bias/epilogue stays in f32.
        self.weights = [w.astype(param_dtype) for w in self.weights_f32]

    def __call__(self, x):
        B = x.shape[0]
        out = mlp_forward_pallas(x, self.weights, self.biases,
                                 batch_tile=self.batch_tile)
        return out[:B, :self.dimout]

    def reference(self, x, *, match_kernel_precision=True):
        """Pure-JAX reference. If match_kernel_precision, mirrors the kernel's
        bf16-operand / f32-accumulate matmuls; otherwise runs fully in f32."""
        weights = self.weights if match_kernel_precision else self.weights_f32
        h = x.astype(jnp.float32)
        for li, (w, b) in enumerate(zip(weights, self.biases)):
            h = jnp.dot(h.astype(w.dtype), w, preferred_element_type=jnp.float32)
            h = h + b.astype(jnp.float32)
            if li < self.n_layers - 1:
                h = jnp.maximum(h, 0.0)
        return h[:, :self.dimout]


if __name__ == "__main__":
    key = jax.random.PRNGKey(0)
    k_x, k_p, k_x2 = jax.random.split(key, 3)

    batch, dimin, dimout = 8, 32, 16
    hidden = [64, 48]

    model = SeqPersoPallas(dimin, dimout, hidden, k_p)

    # --- single-tile path ------------------------------------------------
    x = jax.random.normal(k_x, (batch, dimin), dtype=jnp.float32)
    out = jax.block_until_ready(model(x))
    assert out.shape == (batch, dimout), out.shape

    ref_matched = model.reference(x, match_kernel_precision=True)
    ref_f32 = model.reference(x, match_kernel_precision=False)
    assert jnp.allclose(out, ref_matched, atol=1e-3, rtol=1e-3), \
        "mismatch vs matched-precision reference"
    assert jnp.allclose(out, ref_f32, atol=5e-2, rtol=5e-2), \
        "mismatch vs f32 reference"

    # --- multi-tile path (batch tiling + 'parallel' axis + batch padding) --
    model_tiled = SeqPersoPallas(dimin, dimout, hidden, k_p, batch_tile=16)
    x2 = jax.random.normal(k_x2, (44, dimin), dtype=jnp.float32)  # pads 44 -> 48
    out2 = jax.block_until_ready(model_tiled(x2))
    assert out2.shape == (44, dimout), out2.shape
    ref2 = model_tiled.reference(x2, match_kernel_precision=True)
    assert jnp.allclose(out2, ref2, atol=1e-3, rtol=1e-3), \
        "mismatch vs reference (tiled path)"

    # --- auto-tile path (VMEM-budgeted tile selection) ---------------------
    x3 = jax.random.normal(k_x2, (600, dimin), dtype=jnp.float32)  # 600 -> 2 tiles
    out3 = jax.block_until_ready(model(x3))
    assert out3.shape == (600, dimout), out3.shape
    ref3 = model.reference(x3, match_kernel_precision=True)
    assert jnp.allclose(out3, ref3, atol=1e-3, rtol=1e-3), \
        "mismatch vs reference (auto-tile path)"

    print("KERNEL_OK")
</pallas_src>

<mosaic_0001>
module attributes {stable_mosaic.version = 11 : i64} {
  func.func @_mlp_kernel(%arg0: i32, %arg1: memref<8x32xf32, #tpu.memory_space<vmem>>, %arg2: memref<32x128xbf16, #tpu.memory_space<vmem>>, %arg3: memref<1x128xf32, #tpu.memory_space<vmem>>, %arg4: memref<128x128xbf16, #tpu.memory_space<vmem>>, %arg5: memref<1x128xf32, #tpu.memory_space<vmem>>, %arg6: memref<128x128xbf16, #tpu.memory_space<vmem>>, %arg7: memref<1x128xf32, #tpu.memory_space<vmem>>, %arg8: memref<8x128xf32, #tpu.memory_space<vmem>>) attributes {dimension_semantics = [#tpu.dimension_semantics<parallel>], iteration_bounds = array<i64: 1>, scalar_prefetch = 0 : i64, scratch_operands = 0 : i64, tpu.core_type = #tpu.core_type<tc>, window_params = [{transform_indices = @transform_0, window_bounds = array<i64: 8, 32>}, {pipeline_mode = #tpu.pipeline_mode<synchronous>, transform_indices = @transform_1, window_bounds = array<i64: 32, 128>}, {pipeline_mode = #tpu.pipeline_mode<synchronous>, transform_indices = @transform_2, window_bounds = array<i64: 1, 128>}, {pipeline_mode = #tpu.pipeline_mode<synchronous>, transform_indices = @transform_3, window_bounds = array<i64: 128, 128>}, {pipeline_mode = #tpu.pipeline_mode<synchronous>, transform_indices = @transform_4, window_bounds = array<i64: 1, 128>}, {pipeline_mode = #tpu.pipeline_mode<synchronous>, transform_indices = @transform_5, window_bounds = array<i64: 128, 128>}, {pipeline_mode = #tpu.pipeline_mode<synchronous>, transform_indices = @transform_6, window_bounds = array<i64: 1, 128>}, {transform_indices = @transform_7, window_bounds = array<i64: 8, 128>}]} {
    %c0 = arith.constant 0 : index
    %c0_0 = arith.constant 0 : index
    %0 = vector.load %arg1[%c0, %c0_0] : memref<8x32xf32, #tpu.memory_space<vmem>>, vector<8x32xf32>
    %1 = arith.truncf %0 : vector<8x32xf32> to vector<8x32xbf16>
    %c0_1 = arith.constant 0 : index
    %c0_2 = arith.constant 0 : index
    %2 = vector.load %arg2[%c0_1, %c0_2] : memref<32x128xbf16, #tpu.memory_space<vmem>>, vector<32x128xbf16>
    %cst = arith.constant dense<0.000000e+00> : vector<8x128xf32>
    %3 = tpu.matmul %1, %2, %cst {dimension_numbers = #tpu.dot_dimension_numbers<[1], [0], [0], [1], [0, 0, 1, 1], [], []>} : vector<8x32xbf16>, vector<32x128xbf16>, vector<8x128xf32> -> vector<8x128xf32>
    %c0_3 = arith.constant 0 : index
    %c0_4 = arith.constant 0 : index
    %4 = vector.load %arg3[%c0_3, %c0_4] : memref<1x128xf32, #tpu.memory_space<vmem>>, vector<1x128xf32>
    %5 = vector.broadcast %4 : vector<1x128xf32> to vector<8x128xf32>
    %6 = arith.addf %3, %5 : vector<8x128xf32>
    %cst_5 = arith.constant 0.000000e+00 : f32
    %7 = vector.broadcast %cst_5 : f32 to vector<8x128xf32>
    %8 = arith.maximumf %6, %7 : vector<8x128xf32>
    %9 = arith.truncf %8 : vector<8x128xf32> to vector<8x128xbf16>
    %c0_6 = arith.constant 0 : index
    %c0_7 = arith.constant 0 : index
    %10 = vector.load %arg4[%c0_6, %c0_7] : memref<128x128xbf16, #tpu.memory_space<vmem>>, vector<128x128xbf16>
    %cst_8 = arith.constant dense<0.000000e+00> : vector<8x128xf32>
    %11 = tpu.matmul %9, %10, %cst_8 {dimension_numbers = #tpu.dot_dimension_numbers<[1], [0], [0], [1], [0, 0, 1, 1], [], []>} : vector<8x128xbf16>, vector<128x128xbf16>, vector<8x128xf32> -> vector<8x128xf32>
    %c0_9 = arith.constant 0 : index
    %c0_10 = arith.constant 0 : index
    %12 = vector.load %arg5[%c0_9, %c0_10] : memref<1x128xf32, #tpu.memory_space<vmem>>, vector<1x128xf32>
    %13 = vector.broadcast %12 : vector<1x128xf32> to vector<8x128xf32>
    %14 = arith.addf %11, %13 : vector<8x128xf32>
    %cst_11 = arith.constant 0.000000e+00 : f32
    %15 = vector.broadcast %cst_11 : f32 to vector<8x128xf32>
    %16 = arith.maximumf %14, %15 : vector<8x128xf32>
    %17 = arith.truncf %16 : vector<8x128xf32> to vector<8x128xbf16>
    %c0_12 = arith.constant 0 : index
    %c0_13 = arith.constant 0 : index
    %18 = vector.load %arg6[%c0_12, %c0_13] : memref<128x128xbf16, #tpu.memory_space<vmem>>, vector<128x128xbf16>
    %cst_14 = arith.constant dense<0.000000e+00> : vector<8x128xf32>
    %19 = tpu.matmul %17, %18, %cst_14 {dimension_numbers = #tpu.dot_dimension_numbers<[1], [0], [0], [1], [0, 0, 1, 1], [], []>} : vector<8x128xbf16>, vector<128x128xbf16>, vector<8x128xf32> -> vector<8x128xf32>
    %c0_15 = arith.constant 0 : index
    %c0_16 = arith.constant 0 : index
    %20 = vector.load %arg7[%c0_15, %c0_16] : memref<1x128xf32, #tpu.memory_space<vmem>>, vector<1x128xf32>
    %21 = vector.broadcast %20 : vector<1x128xf32> to vector<8x128xf32>
    %22 = arith.addf %19, %21 : vector<8x128xf32>
    %c0_17 = arith.constant 0 : index
    %c0_18 = arith.constant 0 : index
    %23 = vector.load %arg8[%c0_17, %c0_18] : memref<8x128xf32, #tpu.memory_space<vmem>>, vector<8x128xf32>
    tpu.vector_store %arg8[%c0_17, %c0_18], %22 {strides = array<i32>} : memref<8x128xf32, #tpu.memory_space<vmem>>, vector<8x128xf32>,
    return
  }
  func.func @transform_0(%arg0: i32) -> (i32, i32) {
    %c0_i32 = arith.constant 0 : i32
    %c0_i32_0 = arith.constant 0 : i32
    return %arg0, %c0_i32 : i32, i32
  }
  func.func @transform_1(%arg0: i32) -> (i32, i32) {
    %c0_i32 = arith.constant 0 : i32
    %c0_i32_0 = arith.constant 0 : i32
    %c0_i32_1 = arith.constant 0 : i32
    return %c0_i32, %c0_i32_0 : i32, i32
  }
  func.func @transform_2(%arg0: i32) -> (i32, i32) {
    %c0_i32 = arith.constant 0 : i32
    %c0_i32_0 = arith.constant 0 : i32
    %c0_i32_1 = arith.constant 0 : i32
    return %c0_i32, %c0_i32_0 : i32, i32
  }
  func.func @transform_3(%arg0: i32) -> (i32, i32) {
    %c0_i32 = arith.constant 0 : i32
    %c0_i32_0 = arith.constant 0 : i32
    %c0_i32_1 = arith.constant 0 : i32
    return %c0_i32, %c0_i32_0 : i32, i32
  }
  func.func @transform_4(%arg0: i32) -> (i32, i32) {
    %c0_i32 = arith.constant 0 : i32
    %c0_i32_0 = arith.constant 0 : i32
    %c0_i32_1 = arith.constant 0 : i32
    return %c0_i32, %c0_i32_0 : i32, i32
  }
  func.func @transform_5(%arg0: i32) -> (i32, i32) {
    %c0_i32 = arith.constant 0 : i32
    %c0_i32_0 = arith.constant 0 : i32
    %c0_i32_1 = arith.constant 0 : i32
    return %c0_i32, %c0_i32_0 : i32, i32
  }
  func.func @transform_6(%arg0: i32) -> (i32, i32) {
    %c0_i32 = arith.constant 0 : i32
    %c0_i32_0 = arith.constant 0 : i32
    %c0_i32_1 = arith.constant 0 : i32
    return %c0_i32, %c0_i32_0 : i32, i32
  }
  func.func @transform_7(%arg0: i32) -> (i32, i32) {
    %c0_i32 = arith.constant 0 : i32
    %c0_i32_0 = arith.constant 0 : i32
    return %arg0, %c0_i32 : i32, i32
  }
}

</mosaic_0001>

<bundles_post_ra>
// kernel: tpu_custom_call.1
= control target key start
LH: loop header
LB: loop body
LE: loop exit
PB: predicated region body
PF: predicated region fallthrough
CT: control target
= control target key end

     0   :  { %12 = vsyncpa [#allocation3], 0  ;;  %s614_s0 = inlined_call_operand.hbm [shape: f32[8,32], index: 0, kind: input, shape index: {}]   ;;  %s615_s1 = inlined_call_operand.hbm [shape: bf16[32,128], index: 1, kind: input, shape index: {}]   ;;  %s616_s2 = inlined_call_operand.vmem [shape: f32[1,128], index: 2, kind: input, shape index: {}]   ;;  %s617_s3 = inlined_call_operand.hbm [shape: bf16[128,128], index: 3, kind: input, shape index: {}]   ;;  %s618_s4 = inlined_call_operand.vmem [shape: f32[1,128], index: 4, kind: input, shape index: {}]   ;;  %s619_s5 = inlined_call_operand.hbm [shape: bf16[128,128], index: 5, kind: input, shape index: {}]   ;;  %s620_s6 = inlined_call_operand.vmem [shape: f32[1,128], index: 6, kind: input, shape index: {}]   ;;  %s621_s7 = inlined_call_operand.hbm [shape: f32[8,128], index: 7, kind: output, shape index: {}]  }
   0x1   :  { %13 = vsyncpa [#allocation6], 0 }
   0x2   :  { %14 = vsyncpa [#allocation9], 0  ;;  %s31_s26 = sshll.u32 %s615_s1, 4  ;;  %s32_s26 = int_to_ptr.hbm [resolvable:$true] %s31_s26 }
   0x3   :  { %15 = vsyncpa [#allocation4], 0  ;;  %s543_s27 = smov [#allocation5]   ;;  %s21_s8 = sshll.u32 %s614_s0, 4  ;;  %s22_s8 = int_to_ptr.hbm [resolvable:$true] %s21_s8 }
   0x4   :  { %s33_s28 = sshll.u32 %s543_s27, 4  ;;  %s544_s9 = smov 64   ;;  %s34_s28 = int_to_ptr.vmem [resolvable:$true] %s33_s28 }
   0x5   :  { %s545_s10 = smov 4   ;;  %s546_s11 = smov [#allocation2]  }
   0x6   :  { %39 = dma.hbm_to_vmem [thread:$0]  %s32_s26, 256, %s34_s28, [#allocation6], %s544_s9, %s544_s9, %s545_s10  }
   0x7   :  { %s23_s12 = sshll.u32 %s546_s11, 4  ;;  %s46_s15 = sshll.u32 %s617_s3, 4  ;;  %s24_s12 = int_to_ptr.vmem [resolvable:$true] %s23_s12  ;;  %s47_s15 = int_to_ptr.hbm [resolvable:$true] %s46_s15 }
   0x8   :  { %26 = dma.hbm_to_vmem [thread:$0]  %s22_s8, 128, %s24_s12, [#allocation3]  }
   0x9   :  { %s61_s17 = sshll.u32 %s619_s5, 4  ;;  %s547_s18 = smov [#allocation7]   ;;  %s62_s17 = int_to_ptr.hbm [resolvable:$true] %s61_s17 }
   0xa   :  { %s48_s19 = sshll.u32 %s547_s18, 4  ;;  %s548_s0 = smov [#allocation8]   ;;  %s49_s19 = int_to_ptr.vmem [resolvable:$true] %s48_s19 }
   0xb   :  { %54 = dma.hbm_to_vmem [thread:$0]  %s47_s15, 1024, %s49_s19, [#allocation6], %s544_s9, %s544_s9, %s545_s10  }
   0xc   :  { %s63_s20 = sshll.u32 %s548_s0, 4  ;;  %s64_s20 = int_to_ptr.vmem [resolvable:$true] %s63_s20 }
   0xd   :  { %69 = dma.hbm_to_vmem [thread:$0]  %s62_s17, 1024, %s64_s20, [#allocation9], %s544_s9, %s544_s9, %s545_s10  }
   0xe   :  { %535 = dma.done.wait [#allocation3], 128  }
   0xf   :  { %536 = vsyncadd [#allocation3], 4294967168 }
  0x10   :  { %537 = dma.done.wait [#allocation6], 1280  }
  0x11   :  { %538 = vsyncadd [#allocation6], 4294966016 }
  0x12   :  { %539 = dma.done.wait [#allocation9], 1024  }
  0x13   :  { %540 = vsyncadd [#allocation9], 4294966272  ;;  %v388_v0 = vld [vmem:[#allocation5 + $0x8] sm:$0xff]  ;;  %v387_v2 = vld [vmem:[#allocation5] sm:$0xff]  ;;  %vm111_vm0 = vcmask 261120   ;;  %s549_s24 = smov [#allocation10]  }
  0x14   :  { %v396_v1 = vld [vmem:[#allocation7 + $0x38] sm:$0xff]  ;;  %121 = vmatpush.bf16.msra.mxu0 %v388_v0  ;;  %v89_v3 = vld [vmem:[#allocation2] sm:$0xff]  ;;  %v395_v4 = vld [vmem:[#allocation7 + $0x30] sm:$0xff]  ;;  %s300_s25 = sshll.u32 %s549_s24, 4  ;;  %s302_s28 = sshll.u32 %s621_s7, 4  ;;  %s301_s25 = int_to_ptr.vmem [resolvable:$true] %s300_s25  ;;  %s303_s28 = int_to_ptr.hbm [resolvable:$true] %s302_s28 }
  0x15   :  { %198 = vmatpush.bf16.msra.mxu1 %v396_v1  ;;  %v90_v5 = vpack.c.bf16 %v89_v3, %v89_v3  ;;  %v394_v6 = vld [vmem:[#allocation7 + $0x28] sm:$0xff]  ;;  %v393_v7 = vld [vmem:[#allocation7 + $0x20] sm:$0xff]  ;;  %v392_v8 = vld [vmem:[#allocation7 + $0x18] sm:$0xff] }
  0x16   :  { %v391_v9 = vld [vmem:[#allocation7 + $0x10] sm:$0xff]  ;;  %v390_v10 = vld [vmem:[#allocation7 + $0x8] sm:$0xff]  ;;  %v389_v11 = vld [vmem:[#allocation7] sm:$0xff] }
  0x17   :  { %v404_v12 = vld [vmem:[#allocation8 + $0x38] sm:$0xff]  ;;  %v403_v13 = vld [vmem:[#allocation8 + $0x30] sm:$0xff]  ;;  %v402_v14 = vld [vmem:[#allocation8 + $0x28] sm:$0xff] }
  0x18   :  { %122 = vmatpush.bf16.msra.mxu0 %v387_v2  ;;  %281 = vmatpush.bf16.msra.mxu2 %v404_v12  ;;  %v401_v15 = vld [vmem:[#allocation8 + $0x20] sm:$0xff]  ;;  %v400_v16 = vld [vmem:[#allocation8 + $0x18] sm:$0xff]  ;;  %v399_v17 = vld [vmem:[#allocation8 + $0x10] sm:$0xff] }
  0x19   :  { %199 = vmatpush.bf16.msra.mxu1 %v395_v4  ;;  %v412_v18 = vld [vmem:[%s616_s2] ss:$0 sm:$0xff]  ;;  %v397_v25 = vld [vmem:[#allocation8] sm:$0xff] }
  0x1a   :  { %v398_v24 = vld [vmem:[#allocation8 + $0x8] sm:$0xff] }
  0x1b   :  { %322 = vmatmul.msk.bf16.vlgmr.msra.gmra.mxu0 %vm111_vm0, %v90_v5  ;;  %v413_v26 = vld [vmem:[%s618_s4] ss:$0 sm:$0xff] }
  0x1c   :  { %282 = vmatpush.bf16.msra.mxu2 %v403_v13  ;;  %v414_v32 = vld [vmem:[%s620_s6] ss:$0 sm:$0xff] }
  0x1d   :  { %200 = vmatpush.bf16.msra.mxu1 %v394_v6 }
  0x20   :  { %283 = vmatpush.bf16.msra.mxu2 %v402_v14 }
  0x21   :  { %201 = vmatpush.bf16.msra.mxu1 %v393_v7 }
  0x24   :  { %284 = vmatpush.bf16.msra.mxu2 %v401_v15 }
  0x25   :  { %202 = vmatpush.bf16.msra.mxu1 %v392_v8 }
  0x28   :  { %285 = vmatpush.bf16.msra.mxu2 %v400_v16 }
  0x29   :  { %203 = vmatpush.bf16.msra.mxu1 %v391_v9 }
  0x2c   :  { %286 = vmatpush.bf16.msra.mxu2 %v399_v17 }
  0x2d   :  { %204 = vmatpush.bf16.msra.mxu1 %v390_v10 }
  0x30   :  { %287 = vmatpush.bf16.msra.mxu2 %v398_v24 }
  0x31   :  { %205 = vmatpush.bf16.msra.mxu1 %v389_v11 }
  0x34   :  { %288 = vmatpush.bf16.msra.mxu2 %v397_v25 }
  0x98   :  { %v124_v19 = vpop.f32.mrf.mxu0 }
  0x99   :  { %v125_v20 = vadd.f32 %v412_v18, %v124_v19 }
  0x9b   :  { %v128_v21 = vmax.f32 %v125_v20, 0.0 }
  0x9d   :  { %v129_v22 = vpack.c.bf16 %v128_v21, %v128_v21 }
  0x9f   :  { %206 = vmatmul.bf16.vlgmr.msra.gmra.mxu1 %v129_v22 }
  0xa0   :  { %v126_v23 = vpop.f32.mrf.mxu0 }
 0x11c   :  { %v207_v27 = vpop.f32.mrf.mxu1 }
 0x11d   :  { %v208_v28 = vadd.f32 %v413_v26, %v207_v27 }
 0x11f   :  { %v211_v29 = vmax.f32 %v208_v28, 0.0 }
 0x121   :  { %v212_v30 = vpack.c.bf16 %v211_v29, %v211_v29 }
 0x123   :  { %289 = vmatmul.bf16.vlgmr.msra.gmra.mxu2 %v212_v30 }
 0x124   :  { %v209_v31 = vpop.f32.mrf.mxu1 }
 0x1a6   :  { %v290_v33 = vpop.f32.mrf.mxu2 }
 0x1a7   :  { %v291_v34 = vadd.f32 %v414_v32, %v290_v33 }
 0x1a9   :  { %294 = vst [vmem:[#allocation10] sm:$0xff] %v291_v34 }
 0x1aa   :  { %305 = dma.vmem_to_hbm [thread:$0]  %s301_s25, 128, %s303_s28, [#allocation4]  }
 0x1ae   :  { %v292_v35 = vpop.f32.mrf.mxu2 }
 0x1af   :  { %541 = dma.done.wait [#allocation4], 128  }
 0x1b0   :  { %542 = vsyncadd [#allocation4], 4294967168 }
 0x1b1   :  { %310 = vsyncpa [#allocation3], 1 }
 0x1b2   :  { %311 = vsyncpa [#allocation6], 1 }
 0x1b3   :  { %312 = vsyncpa [#allocation9], 1 }
 0x1b4   :  { %313 = vsyncpa [#allocation4], 1 }

</bundles_post_ra>
